<compile_context>
chip_gen: v7x
topology: tpu7x:2x2x1
jax: 0.10.0
libtpu: 0.0.40
codegen_flags: <defaults>
</compile_context>

<pallas_src>
import jax
import jax.numpy as jnp
from jax.experimental import pallas as pl
from jax.experimental.pallas import tpu as pltpu


def _round_up(x, m):
    return ((x + m - 1) // m) * m


def _cls_head_kernel(feat_ref, w_ref, b_ref, out_ref):
    # feat_ref: [TB, 1, 1, H]  — only the CLS token of this batch tile (strided DMA)
    # w_ref:    [H, NL_pad]    — VMEM-resident across the grid
    # b_ref:    [1, NL_pad]
    # out_ref:  [TB, NL_pad]
    cls = feat_ref[:, 0, 0, :]                                   # [TB, H]
    logits = jnp.dot(cls, w_ref[...], preferred_element_type=jnp.float32)
    logits = logits + b_ref[...].astype(jnp.float32)             # bias broadcast over batch
    out_ref[...] = logits.astype(out_ref.dtype)


def classification_head(features, weight_t, bias, *, max_batch_tile=256):
    """features: [B, S, H]; weight_t: [H, num_labels] (transposed nn.Linear weight);
    bias: [num_labels]. Returns logits [B, num_labels] == dense(features[:, 0, :])."""
    B, S, H = features.shape
    num_labels = weight_t.shape[1]
    dsize = jnp.dtype(features.dtype).itemsize

    # Lane-dense output: pad label dim to a multiple of 128 (zeros are inert).
    nl_pad = max(128, _round_up(num_labels, 128))
    w_pad = jnp.zeros((H, nl_pad), weight_t.dtype).at[:, :num_labels].set(weight_t)
    b_pad = jnp.zeros((1, nl_pad), bias.dtype).at[0, :num_labels].set(bias)

    # Batch tile: multiple of 8 sublanes, capped at 256 (MXU height on v6e/v7x).
    TB = min(max_batch_tile, _round_up(B, 8))
    B_pad = _round_up(B, TB)

    # Metadata-only reshape so the CLS block's last two dims are the full (1, H).
    feat4 = features.reshape(B, S, 1, H)
    if B_pad != B:
        # Tiny for small B; production callers should use a tile-aligned batch
        # to avoid copying the activation tensor.
        feat4 = jnp.pad(feat4, ((0, B_pad - B), (0, 0), (0, 0), (0, 0)))

    grid = (B_pad // TB,)

    cost = pl.CostEstimate(
        flops=2 * B_pad * H * nl_pad,
        transcendentals=0,
        bytes_accessed=(B_pad * H + H * nl_pad + nl_pad + B_pad * nl_pad) * dsize,
    )

    out = pl.pallas_call(
        _cls_head_kernel,
        out_shape=jax.ShapeDtypeStruct((B_pad, nl_pad), features.dtype),
        grid_spec=pltpu.PrefetchScalarGridSpec(
            num_scalar_prefetch=0,
            grid=grid,
            in_specs=[
                # CLS-only strided fetch: (TB, 1, 1, H) slab at seq position 0.
                pl.BlockSpec((TB, 1, 1, H), lambda i: (i, 0, 0, 0)),
                # Weight / bias stay resident (constant block index).
                pl.BlockSpec((H, nl_pad), lambda i: (0, 0)),
                pl.BlockSpec((1, nl_pad), lambda i: (0, 0)),
            ],
            out_specs=pl.BlockSpec((TB, nl_pad), lambda i: (i, 0)),
        ),
        compiler_params=pltpu.CompilerParams(
            dimension_semantics=("parallel",),  # batch tiles are independent → megacore on v7x
        ),
        cost_estimate=cost,
    )(feat4, w_pad, b_pad)

    return out[:B, :num_labels]


if __name__ == "__main__":
    # Small shapes consistent with the module: batch=2, seq=8, hidden=32, labels=2
    B, S, H, NUM_LABELS = 2, 8, 32, 2

    key = jax.random.PRNGKey(0)
    k_feat, k_w, k_b = jax.random.split(key, 3)

    features = jax.random.normal(k_feat, (B, S, H), dtype=jnp.float32)

    # Deterministic nn.Linear-style init: U(-1/sqrt(H), 1/sqrt(H)).
    bound = 1.0 / (H ** 0.5)
    # PyTorch weight shape is (num_labels, H); store its transpose (H, num_labels).
    weight = jax.random.uniform(k_w, (NUM_LABELS, H), jnp.float32, -bound, bound)
    bias = jax.random.uniform(k_b, (NUM_LABELS,), jnp.float32, -bound, bound)
    weight_t = weight.T

    logits = classification_head(features, weight_t, bias)
    logits = jax.block_until_ready(logits)

    # Reference check in plain JAX (same semantics as the PyTorch forward).
    ref = features[:, 0, :] @ weight_t + bias
    assert logits.shape == (B, NUM_LABELS)
    assert jnp.allclose(logits, ref, atol=1e-5, rtol=1e-5)

    print("KERNEL_OK")
</pallas_src>

<mosaic_0001>
module attributes {stable_mosaic.version = 11 : i64} {
  func.func @_cls_head_kernel(%arg0: i32, %arg1: memref<8x1x1x32xf32, #tpu.memory_space<vmem>>, %arg2: memref<32x128xf32, #tpu.memory_space<vmem>>, %arg3: memref<1x128xf32, #tpu.memory_space<vmem>>, %arg4: memref<8x128xf32, #tpu.memory_space<vmem>>) attributes {dimension_semantics = [#tpu.dimension_semantics<parallel>], iteration_bounds = array<i64: 1>, scalar_prefetch = 0 : i64, scratch_operands = 0 : i64, tpu.core_type = #tpu.core_type<tc>, window_params = [{transform_indices = @transform_0, window_bounds = array<i64: 8, 1, 1, 32>}, {pipeline_mode = #tpu.pipeline_mode<synchronous>, transform_indices = @transform_1, window_bounds = array<i64: 32, 128>}, {pipeline_mode = #tpu.pipeline_mode<synchronous>, transform_indices = @transform_2, window_bounds = array<i64: 1, 128>}, {transform_indices = @transform_3, window_bounds = array<i64: 8, 128>}]} {
    %c0 = arith.constant 0 : index
    %c0_0 = arith.constant 0 : index
    %c0_1 = arith.constant 0 : index
    %c0_2 = arith.constant 0 : index
    %0 = vector.load %arg1[%c0, %c0_0, %c0_1, %c0_2] : memref<8x1x1x32xf32, #tpu.memory_space<vmem>>, vector<8x1x1x32xf32>
    %1 = vector.shape_cast %0 : vector<8x1x1x32xf32> to vector<8x32xf32>
    %c0_3 = arith.constant 0 : index
    %c0_4 = arith.constant 0 : index
    %2 = vector.load %arg2[%c0_3, %c0_4] : memref<32x128xf32, #tpu.memory_space<vmem>>, vector<32x128xf32>
    %cst = arith.constant dense<0.000000e+00> : vector<8x128xf32>
    %3 = tpu.matmul %1, %2, %cst {dimension_numbers = #tpu.dot_dimension_numbers<[1], [0], [0], [1], [0, 0, 1, 1], [], []>} : vector<8x32xf32>, vector<32x128xf32>, vector<8x128xf32> -> vector<8x128xf32>
    %c0_5 = arith.constant 0 : index
    %c0_6 = arith.constant 0 : index
    %4 = vector.load %arg3[%c0_5, %c0_6] : memref<1x128xf32, #tpu.memory_space<vmem>>, vector<1x128xf32>
    %5 = vector.broadcast %4 : vector<1x128xf32> to vector<8x128xf32>
    %6 = arith.addf %3, %5 : vector<8x128xf32>
    %c0_7 = arith.constant 0 : index
    %c0_8 = arith.constant 0 : index
    %7 = vector.load %arg4[%c0_7, %c0_8] : memref<8x128xf32, #tpu.memory_space<vmem>>, vector<8x128xf32>
    tpu.vector_store %arg4[%c0_7, %c0_8], %6 {strides = array<i32>} : memref<8x128xf32, #tpu.memory_space<vmem>>, vector<8x128xf32>,
    return
  }
  func.func @transform_0(%arg0: i32) -> (i32, i32, i32, i32) {
    %c0_i32 = arith.constant 0 : i32
    %c0_i32_0 = arith.constant 0 : i32
    %c0_i32_1 = arith.constant 0 : i32
    %c0_i32_2 = arith.constant 0 : i32
    return %arg0, %c0_i32, %c0_i32_0, %c0_i32_1 : i32, i32, i32, i32
  }
  func.func @transform_1(%arg0: i32) -> (i32, i32) {
    %c0_i32 = arith.constant 0 : i32
    %c0_i32_0 = arith.constant 0 : i32
    %c0_i32_1 = arith.constant 0 : i32
    return %c0_i32, %c0_i32_0 : i32, i32
  }
  func.func @transform_2(%arg0: i32) -> (i32, i32) {
    %c0_i32 = arith.constant 0 : i32
    %c0_i32_0 = arith.constant 0 : i32
    %c0_i32_1 = arith.constant 0 : i32
    return %c0_i32, %c0_i32_0 : i32, i32
  }
  func.func @transform_3(%arg0: i32) -> (i32, i32) {
    %c0_i32 = arith.constant 0 : i32
    %c0_i32_0 = arith.constant 0 : i32
    return %arg0, %c0_i32 : i32, i32
  }
}

</mosaic_0001>

<bundles_post_ra>
// kernel: tpu_custom_call.1
= control target key start
LH: loop header
LB: loop body
LE: loop exit
PB: predicated region body
PF: predicated region fallthrough
CT: control target
= control target key end

     0   :  { %8 = vsyncpa [#allocation3], 0  ;;  %s389_s0 = inlined_call_operand.hbm [shape: f32[8,8,1,32], index: 0, kind: input, shape index: {}]   ;;  %s390_s1 = inlined_call_operand.hbm [shape: f32[32,128], index: 1, kind: input, shape index: {}]   ;;  %s391_s2 = inlined_call_operand.vmem [shape: f32[1,128], index: 2, kind: input, shape index: {}]   ;;  %s392_s3 = inlined_call_operand.hbm [shape: f32[8,128], index: 3, kind: output, shape index: {}]  }
   0x1   :  { %9 = vsyncpa [#allocation6], 0 }
   0x2   :  { %10 = vsyncpa [#allocation4], 0  ;;  %s316_s12 = smov [#allocation2]   ;;  %s244_s16 = scalar_lea.hbm %s389_s0, 128 }
   0x3   :  { %s16_s13 = sshll.u32 %s316_s12, 4  ;;  %p245_p0 = scmp.ne.s32.totalorder %s389_s0, %s244_s16  ;;  %s17_s13 = int_to_ptr.vmem [resolvable:$true] %s16_s13 }
   0x4   :  { %s246_s21 = scalar_lea.hbm %s389_s0, 1024  ;;  %p248_p2 = scmp.lt.u32.totalorder %s244_s16, %s389_s0 }
   0x5   :  { %p247_p1 = scmp.lt.u32.totalorder %s246_s21, %s244_s16 }
   0x7   :  { %p249_p3 = por %p248_p2, %p247_p1 }
   0x9   :  { %p250_p4 = pnand %p249_p3, %p245_p0 }
   0xb   :  { %253 = shalt.err (!%p250_p4)
}
   0xc   :  { %s254_s24 = scalar_lea.vmem %s17_s13, 128  ;;  %p259_p6 = scmp.lt.s32.totalorder %s17_s13, %s17_s13 }
   0xd   :  { %p255_p5 = scmp.ne.s32.totalorder %s17_s13, %s254_s24  ;;  %p260_p7 = scmp.lt.s32.totalorder %s254_s24, %s254_s24 }
   0xf   :  { %p261_p8 = por %p260_p7, %p259_p6 }
  0x11   :  { %p262_p9 = pnand %p261_p8, %p255_p5 }
  0x13   :  { %265 = shalt.err (!%p262_p9)
}
  0x14   :  { %s317_s25 = smov 128   ;;  %s318_s26 = smov 16  }
  0x15   :  { %s319_s27 = smov 1   ;;  %s320_s30 = smov [#allocation5]  }
  0x16   :  { %22 = dma.hbm_to_vmem [thread:$0]  %s389_s0, 128, %s17_s13, [#allocation3], %s317_s25, %s318_s26, %s319_s27  }
  0x17   :  { %s28_s4 = sshll.u32 %s320_s30, 4  ;;  %s266_s7 = scalar_lea.hbm %s390_s1, 512  ;;  %s29_s4 = int_to_ptr.vmem [resolvable:$true] %s28_s4 }
  0x18   :  { %p267_p10 = scmp.ne.s32.totalorder %s390_s1, %s266_s7  ;;  %p270_p11 = scmp.lt.u32.totalorder %s266_s7, %s390_s1 }
  0x1a   :  { %p272_p12 = pnand %p270_p11, %p267_p10 }
  0x1c   :  { %275 = shalt.err (!%p272_p12)
}
  0x1d   :  { %s276_s12 = scalar_lea.vmem %s29_s4, 512  ;;  %p281_p0 = scmp.lt.s32.totalorder %s29_s4, %s29_s4 }
  0x1e   :  { %p277_p13 = scmp.ne.s32.totalorder %s29_s4, %s276_s12  ;;  %p282_p1 = scmp.lt.s32.totalorder %s276_s12, %s276_s12 }
  0x20   :  { %p283_p2 = por %p282_p1, %p281_p0 }
  0x22   :  { %p284_p3 = pnand %p283_p2, %p277_p13 }
  0x24   :  { %287 = shalt.err (!%p284_p3)
}
  0x25   :  { %s321_s0 = smov 8  }
  0x26   :  { %34 = dma.hbm_to_vmem [thread:$0]  %s390_s1, 512, %s29_s4, [#allocation6], %s317_s25, %s317_s25, %s321_s0  }
  0x27   :  { %310 = dma.done.wait [#allocation3], 128  }
  0x28   :  { %311 = vsyncadd [#allocation3], 4294967168 }
  0x29   :  { %312 = dma.done.wait [#allocation6], 512  }
  0x2a   :  { %313 = vsyncadd [#allocation6], 4294966784  ;;  %v77_v0 = vlaneseq  ;;  %v322_v1 = vmov 0.0|0.0   ;;  %vm323_vm0 = vmmov 0   ;;  %v324_v2 = vmov 0.0   ;;  %v51_v7 = vld [vmem:[#allocation5] sm:$0xff] }
  0x2b   :  { %227 = vmatprep.subr.bf16.mxu0 %v322_v1  ;;  %224 = vmatprep.mubr.msk.f32.mxu0 %vm323_vm0, %v324_v2  ;;  %v325_v3 = vmov 1966171168   ;;  %v52_v8 = vld [vmem:[#allocation5 + $0x8] sm:$0xff]  ;;  %v53_v9 = vld [vmem:[#allocation5 + $0x10] sm:$0xff]  ;;  %v54_v12 = vld [vmem:[#allocation5 + $0x18] sm:$0xff]  ;;  %vm119_vm1 = vcmask 261120  }
  0x2c   :  { %v75_v4 = vunpack.c.l.s4 %v325_v3  ;;  %v78_v5 = vshrl.u32 %v77_v0, 7  ;;  %v228_v11 = vpack.c.bf16 %v52_v8, %v51_v7  ;;  %v43_v13 = vld [vmem:[#allocation2] sm:$0x1]  ;;  %v44_v14 = vld [vmem:[#allocation2 + $0x1] sm:$0x1]  ;;  %v231_v19 = vpack.c.bf16 %v54_v12, %v53_v9  ;;  %s326_s16 = smov [#allocation7]  }
  0x2d   :  { %v45_v15 = vld [vmem:[#allocation2 + $0x2] sm:$0x1]  ;;  %v46_v16 = vld [vmem:[#allocation2 + $0x3] sm:$0x1]  ;;  %v47_v17 = vld [vmem:[#allocation2 + $0x4] sm:$0x1]  ;;  %v70_v18 = vcombine.low %v43_v13, %v44_v14 }
  0x2e   :  { %v76_v6 = vunpack.c.0.s8 %v75_v4  ;;  %229 = vmatpush3.bf16.msra.mxu0 %v228_v11  ;;  %v48_v20 = vld [vmem:[#allocation2 + $0x5] sm:$0x1]  ;;  %v49_v21 = vld [vmem:[#allocation2 + $0x6] sm:$0x1]  ;;  %v50_v22 = vld [vmem:[#allocation2 + $0x7] sm:$0x1]  ;;  %v71_v23 = vcombine.low %v45_v15, %v46_v16 }
  0x2f   :  { %230 = vmatprep.subr.bf16.mxu0 %v322_v1  ;;  %v72_v24 = vcombine.low %v47_v17, %v48_v20  ;;  %v73_v25 = vcombine.low %v49_v21, %v50_v22  ;;  %v209_v35 = vld [vmem:[%s391_s2] ss:$0 sm:$0xff]  ;;  %s199_s17 = sshll.u32 %s326_s16, 4  ;;  %s200_s17 = int_to_ptr.vmem [resolvable:$true] %s199_s17 }
  0x30   :  { %v79_v10 = vsub.s32 %v76_v6, %v78_v5  ;;  %s288_s18 = scalar_lea.vmem %s200_s17, 128  ;;  %p293_p5 = scmp.lt.s32.totalorder %s200_s17, %s200_s17 }
  0x31   :  { %p289_p4 = scmp.ne.s32.totalorder %s200_s17, %s288_s18  ;;  %p294_p6 = scmp.lt.s32.totalorder %s288_s18, %s288_s18 }
  0x32   :  { %v80_v26 = vrot.slane %v70_v18, %v79_v10  ;;  %v87_v27 = vrot.slane %v71_v23, %v79_v10  ;;  %v94_v28 = vrot.slane %v72_v24, %v79_v10  ;;  %v101_v29 = vrot.slane %v73_v25, %v79_v10  ;;  %232 = vmatpush3.bf16.msra.mxu0 %v231_v19 }
  0x33   :  { %p295_p7 = por %p294_p6, %p293_p5 }
  0x34   :  { %v102_v30 = vcombine.low %v80_v26, %v87_v27  ;;  %v103_v31 = vcombine.low %v94_v28, %v101_v29 }
  0x35   :  { %p296_p8 = pnand %p295_p7, %p289_p4 }
  0x36   :  { %v110_v32 = vrot.slane %v102_v30, %v79_v10  ;;  %v117_v33 = vrot.slane %v103_v31, %v79_v10 }
  0x38   :  { %v118_v34 = vcombine.low %v110_v32, %v117_v33 }
  0x3a   :  { %225 = vmatmul.mubr.msk.f32.vlgmr.msra.gmra.mrb[0].mxu0 %vm119_vm1, %v118_v34 }
 0x10d   :  { %v188_v36 = vpop.f32.mrb[0].mxu0 }
 0x10e   :  { %v189_v37 = vadd.f32 %v209_v35, %v188_v36  ;;  %v226_v38 = vpop.f32.mrb[1].mxu0 }
 0x110   :  { %192 = vst [vmem:[#allocation7] sm:$0xff] %v189_v37 }
 0x111   :  { %299 = shalt.err (!%p296_p8)
}
 0x112   :  { %s300_s21 = scalar_lea.hbm %s392_s3, 128 }
 0x113   :  { %p301_p9 = scmp.ne.s32.totalorder %s392_s3, %s300_s21  ;;  %p304_p10 = scmp.lt.u32.totalorder %s300_s21, %s392_s3 }
 0x115   :  { %p306_p11 = pnand %p304_p10, %p301_p9 }
 0x117   :  { %309 = shalt.err (!%p306_p11)
}
 0x118   :  { %202 = dma.vmem_to_hbm [thread:$0]  %s200_s17, 128, %s392_s3, [#allocation4]  }
 0x119   :  { %314 = dma.done.wait [#allocation4], 128  }
 0x11a   :  { %315 = vsyncadd [#allocation4], 4294967168 }
 0x11b   :  { %206 = vsyncpa [#allocation3], 1 }
 0x11c   :  { %207 = vsyncpa [#allocation6], 1 }
 0x11d   :  { %208 = vsyncpa [#allocation4], 1 }

</bundles_post_ra>
